<compile_context>
chip_gen: v5e
topology: v5e:2x2
jax: 0.10.0
libtpu: 0.0.40
codegen_flags: <defaults>
</compile_context>

<pallas_src>
import functools

import jax
import jax.numpy as jnp
from jax.experimental import pallas as pl
from jax.experimental.pallas import tpu as pltpu

_INV_SQRT2 = 0.7071067811865476

# TODO(synk): Dropout with p > 0 (training mode) is not implemented; the module
# default drop=0.0 is an identity, which is what this kernel computes.


# --------------------------------------------------------------------------
# Kernels
# --------------------------------------------------------------------------
def _mlp_partial(x_ref, w1_ref, b1_ref, w2_ref, acc_ref):
    """One hidden-tile contribution: acc += GELU(x @ w1_j + b1_j) @ w2_j."""
    h = jnp.dot(x_ref[...], w1_ref[...], preferred_element_type=jnp.float32)
    h = h + b1_ref[...].astype(jnp.float32)
    # Exact (erf) GELU in f32 — matches torch.nn.GELU() default semantics.
    h = 0.5 * h * (1.0 + jax.lax.erf(h * _INV_SQRT2))
    # Cast h to the weight dtype so bf16 weights stay on the bf16 MXU path
    # (no-op for f32 weights); accumulate the fc2 partial in f32.
    acc_ref[...] += jnp.dot(h.astype(w2_ref.dtype), w2_ref[...],
                            preferred_element_type=jnp.float32)


def _mlp_kernel_f32out(x_ref, w1_ref, b1_ref, w2_ref, b2_ref, o_ref):
    """f32 output: accumulate directly into the resident output block."""
    j = pl.program_id(1)

    @pl.when(j == 0)
    def _init():
        # Initialise with the broadcast fc2 bias -> no bias add in the epilogue.
        o_ref[...] = jnp.broadcast_to(b2_ref[...].astype(o_ref.dtype),
                                      o_ref.shape)

    _mlp_partial(x_ref, w1_ref, b1_ref, w2_ref, o_ref)


def _mlp_kernel_acc(x_ref, w1_ref, b1_ref, w2_ref, b2_ref, o_ref, acc_ref):
    """Low-precision output: accumulate in an f32 VMEM scratch, cast at the end."""
    j = pl.program_id(1)

    @pl.when(j == 0)
    def _init():
        acc_ref[...] = jnp.broadcast_to(b2_ref[...].astype(jnp.float32),
                                        acc_ref.shape)

    _mlp_partial(x_ref, w1_ref, b1_ref, w2_ref, acc_ref)

    @pl.when(j == pl.num_programs(1) - 1)
    def _finalize():
        o_ref[...] = acc_ref[...].astype(o_ref.dtype)


# --------------------------------------------------------------------------
# Tiling / VMEM budgeting helpers (all static / trace-time Python)
# --------------------------------------------------------------------------
def _round_up(v, m):
    return ((v + m - 1) // m) * m


def _sublane_multiple(dtype):
    return {4: 8, 2: 16, 1: 32}.get(jnp.dtype(dtype).itemsize, 8)


def _vmem_limit_bytes():
    """~75% of physical VMEM (96 MiB on v5e/v6e, 48 MiB on v7x's 64 MiB)."""
    try:
        info = pltpu.get_tpu_info()
        cap = int(getattr(info, "vmem_capacity_bytes", 128 * 1024 * 1024))
    except Exception:
        cap = 64 * 1024 * 1024  # be conservative if the query is unavailable
    return int(min(cap * 3 // 4, 100 * 1024 * 1024))


def _pick_tiles(M, D_in, D_hid, D_out_p, x_nb, w_nb, o_nb,
                needs_acc, sub, vmem_budget, tm_req, th_req):
    """Pick (tm, th, M_pad) so the double-buffered working set fits VMEM."""
    M_sub = _round_up(M, sub)

    # ----- hidden (reduction) tile ---------------------------------------
    if th_req is not None:
        assert D_hid % th_req == 0, "th must divide the hidden dimension"
        th_cands = [th_req]
    else:
        th_cands = [c for c in (1024, 512, 256, 128)
                    if c <= D_hid and D_hid % c == 0] or [D_hid]

    # Row count needed to be ~MXU-bound on weight streaming
    # (intensity ~ 2*tm / weight_byte).
    tm_target = max(256, 512 * w_nb)

    best = None
    for th in th_cands:  # largest th first (fewest reduction steps)
        # Double-buffered weight/bias blocks resident per grid step.
        fixed = 2 * (D_in * th + th * D_out_p) * w_nb + 2 * (th + D_out_p) * 4
        # Per-row cost: double-buffered x + out blocks (+ f32 scratch if used).
        per_row = 2 * (D_in * x_nb + D_out_p * o_nb)
        if needs_acc:
            per_row += D_out_p * 4
        tm_max = (vmem_budget - fixed) // per_row if vmem_budget > fixed else 0
        tm_max = max(sub, (tm_max // sub) * sub)
        if tm_max >= min(tm_target, M_sub):
            best = (th, tm_max)
            break
        if best is None or tm_max > best[1]:
            best = (th, tm_max)
    th, tm_max = best
    # TODO(synk): for very wide D_out_p where even th=128 leaves tm tiny, tile
    # D_out_p as an additional "parallel" grid axis instead of shrinking tm.

    # ----- row tile --------------------------------------------------------
    if tm_req is not None:
        tm = max(sub, _round_up(tm_req, sub))
    else:
        cap = max(sub, (min(tm_target, tm_max) // sub) * sub)
        if M_sub <= cap:
            # Whole M fits in one tile; split in two when there is enough work
            # so both TensorCores (v7x megacore) get a row tile.
            if M_sub >= 512:
                tm = _round_up(-(-M_sub // 2), sub)
            else:
                tm = M_sub
        else:
            tm = cap
        # Prefer a slightly smaller tile that divides M exactly: avoids an
        # extra HBM read+write pass just to zero-pad the activations.
        if M % tm != 0:
            t = tm - sub
            while t >= max(sub, tm // 2):
                if M % t == 0:
                    tm = t
                    break
                t -= sub

    M_pad = M if M % tm == 0 else _round_up(M, tm)
    return tm, th, M_pad


# --------------------------------------------------------------------------
# Wrappers
# --------------------------------------------------------------------------
def prepare_mlp_params(w1, b1, w2, b2):
    """One-time (init-time) param prep: lane-pad fc2 weight/bias to 128.

    w1 : (D_in, D_hid)   pre-transposed fc1 weight
    b1 : (D_hid,)
    w2 : (D_hid, D_out)  pre-transposed fc2 weight
    b2 : (D_out,)
    Returns (params, d_out) where params feed mlp_forward.  Doing the padding
    here (not per forward call) removes a full HBM copy of the fc2 weight from
    every step.
    """
    d_out = w2.shape[1]
    d_out_p = _round_up(d_out, 128)
    if d_out_p != d_out:
        w2 = jnp.pad(w2, ((0, 0), (0, d_out_p - d_out)))
        b2 = jnp.pad(b2, (0, d_out_p - d_out))
    return (w1, b1.reshape(1, -1), w2, b2.reshape(1, -1)), d_out


def _mlp_forward_impl(x, w1, b1_2d, w2_p, b2_2d, d_out, tm_req, th_req):
    lead = x.shape[:-1]
    D_in = x.shape[-1]
    D_hid = w1.shape[1]
    D_out_p = w2_p.shape[1]
    M = 1
    for d in lead:
        M *= d

    out_dtype = x.dtype
    needs_acc = jnp.dtype(out_dtype) != jnp.dtype(jnp.float32)
    sub = _sublane_multiple(out_dtype)

    vmem_limit = _vmem_limit_bytes()
    vmem_budget = int(vmem_limit * 0.8)  # headroom for compiler scratch
    x_nb = jnp.dtype(x.dtype).itemsize
    w_nb = jnp.dtype(w1.dtype).itemsize
    o_nb = jnp.dtype(out_dtype).itemsize

    tm, th, M_pad = _pick_tiles(M, D_in, D_hid, D_out_p, x_nb, w_nb, o_nb,
                                needs_acc, sub, vmem_budget, tm_req, th_req)

    x2d = x.reshape(M, D_in)
    if M_pad != M:
        # Correctness fallback only (auto-tiling prefers tiles dividing M).
        x2d = jnp.pad(x2d, ((0, M_pad - M), (0, 0)))

    grid = (M_pad // tm, D_hid // th)  # reduction (hidden) axis last

    in_specs = [
        pl.BlockSpec((tm, D_in), lambda i, j: (i, 0)),      # x row tile
        pl.BlockSpec((D_in, th), lambda i, j: (0, j)),      # w1 slice
        pl.BlockSpec((1, th), lambda i, j: (0, j)),         # b1 slice
        pl.BlockSpec((th, D_out_p), lambda i, j: (j, 0)),   # w2 slice
        pl.BlockSpec((1, D_out_p), lambda i, j: (0, 0)),    # b2 (lane-padded)
    ]
    out_spec = pl.BlockSpec((tm, D_out_p), lambda i, j: (i, 0))

    cparams = pltpu.CompilerParams(
        dimension_semantics=("parallel", "arbitrary"),
        vmem_limit_bytes=vmem_limit,
    )

    if needs_acc:
        out2d = pl.pallas_call(
            _mlp_kernel_acc,
            out_shape=jax.ShapeDtypeStruct((M_pad, D_out_p), out_dtype),
            grid=grid,
            in_specs=in_specs,
            out_specs=out_spec,
            scratch_shapes=[pltpu.VMEM((tm, D_out_p), jnp.float32)],
            compiler_params=cparams,
        )(x2d, w1, b1_2d, w2_p, b2_2d)
    else:
        # f32 output: accumulate directly into the resident output block.
        out2d = pl.pallas_call(
            _mlp_kernel_f32out,
            out_shape=jax.ShapeDtypeStruct((M_pad, D_out_p), out_dtype),
            grid=grid,
            in_specs=in_specs,
            out_specs=out_spec,
            compiler_params=cparams,
        )(x2d, w1, b1_2d, w2_p, b2_2d)

    return out2d[:M, :d_out].reshape(*lead, d_out)


@functools.partial(jax.jit, static_argnames=("d_out", "tm", "th"))
def mlp_forward(x, w1, b1_2d, w2_p, b2_2d, *, d_out, tm=None, th=None):
    """Jitted forward over pre-padded params from prepare_mlp_params."""
    return _mlp_forward_impl(x, w1, b1_2d, w2_p, b2_2d, d_out, tm, th)


def mlp_pallas(x, w1, b1, w2, b2, *, tm=None, th=None):
    """Convenience one-shot API (pads params eagerly, then runs the kernel)."""
    params, d_out = prepare_mlp_params(w1, b1, w2, b2)
    return mlp_forward(x, *params, d_out=d_out, tm=tm, th=th)


def _reference(x2d, w1, b1, w2, b2):
    h = x2d @ w1 + b1
    h = 0.5 * h * (1.0 + jax.lax.erf(h * _INV_SQRT2))
    return h @ w2 + b2


# --------------------------------------------------------------------------
# Self-test
# --------------------------------------------------------------------------
if __name__ == "__main__":
    key = jax.random.PRNGKey(0)

    # --- Config 1: module defaults at small scale (in=32, hidden=64, out=32),
    #     auto tiling, single reduction step, D_out lane padding 32 -> 128. ---
    B, N = 2, 8
    D_in, D_hid, D_out = 32, 64, 32
    kx, k1, k2, k3, k4, key = jax.random.split(key, 6)
    x = jax.random.normal(kx, (B, N, D_in), dtype=jnp.float32)
    # nn.Linear weights (W1:(hid,in), W2:(out,hid)) stored pre-transposed.
    w1 = jax.random.normal(k1, (D_in, D_hid), dtype=jnp.float32) * 0.05
    b1 = jax.random.normal(k2, (D_hid,), dtype=jnp.float32) * 0.05
    w2 = jax.random.normal(k3, (D_hid, D_out), dtype=jnp.float32) * 0.05
    b2 = jax.random.normal(k4, (D_out,), dtype=jnp.float32) * 0.05

    params, d_out = prepare_mlp_params(w1, b1, w2, b2)  # pad once, at init
    out = mlp_forward(x, *params, d_out=d_out)
    jax.block_until_ready(out)
    ref = _reference(x.reshape(-1, D_in), w1, b1, w2, b2).reshape(B, N, D_out)
    assert jnp.allclose(out, ref, atol=1e-4, rtol=1e-4), "config-1 mismatch"

    # --- Config 2: explicit small tiles -> multi row-tile grid, 2-step hidden
    #     reduction, ragged M (72 -> pad 96), f32 direct-output accumulation. --
    B2, N2 = 3, 24
    Di2, Dh2, Do2 = 64, 256, 48
    kx, k1, k2, k3, k4, key = jax.random.split(key, 6)
    x2 = jax.random.normal(kx, (B2, N2, Di2), dtype=jnp.float32)
    w1b = jax.random.normal(k1, (Di2, Dh2), dtype=jnp.float32) * 0.05
    b1b = jax.random.normal(k2, (Dh2,), dtype=jnp.float32) * 0.05
    w2b = jax.random.normal(k3, (Dh2, Do2), dtype=jnp.float32) * 0.05
    b2b = jax.random.normal(k4, (Do2,), dtype=jnp.float32) * 0.05

    out2 = mlp_pallas(x2, w1b, b1b, w2b, b2b, tm=32, th=128)
    jax.block_until_ready(out2)
    ref2 = _reference(x2.reshape(-1, Di2), w1b, b1b, w2b, b2b).reshape(B2, N2, Do2)
    assert jnp.allclose(out2, ref2, atol=1e-4, rtol=1e-4), "config-2 mismatch"

    # --- Config 3: bf16 inputs/weights -> f32-scratch accumulator path,
    #     16-row sublane alignment, bf16 MXU path for both matmuls. ---
    B3, N3 = 2, 16
    Di3, Dh3, Do3 = 64, 128, 64
    kx, k1, k2, k3, k4, key = jax.random.split(key, 6)
    x3 = jax.random.normal(kx, (B3, N3, Di3), dtype=jnp.float32).astype(jnp.bfloat16)
    w1c = (jax.random.normal(k1, (Di3, Dh3), dtype=jnp.float32) * 0.05).astype(jnp.bfloat16)
    b1c = (jax.random.normal(k2, (Dh3,), dtype=jnp.float32) * 0.05).astype(jnp.bfloat16)
    w2c = (jax.random.normal(k3, (Dh3, Do3), dtype=jnp.float32) * 0.05).astype(jnp.bfloat16)
    b2c = (jax.random.normal(k4, (Do3,), dtype=jnp.float32) * 0.05).astype(jnp.bfloat16)

    out3 = mlp_pallas(x3, w1c, b1c, w2c, b2c)
    jax.block_until_ready(out3)
    ref3 = _reference(x3.reshape(-1, Di3).astype(jnp.float32),
                      w1c.astype(jnp.float32), b1c.astype(jnp.float32),
                      w2c.astype(jnp.float32), b2c.astype(jnp.float32)
                      ).reshape(B3, N3, Do3)
    assert jnp.allclose(out3.astype(jnp.float32), ref3, atol=1e-2, rtol=5e-2), \
        "config-3 (bf16) mismatch"

    print("KERNEL_OK")
</pallas_src>

<mosaic_0001>
module attributes {stable_mosaic.version = 11 : i64} {
  func.func @_mlp_kernel_f32out(%arg0: i32, %arg1: i32, %arg2: memref<16x32xf32, #tpu.memory_space<vmem>>, %arg3: memref<32x64xf32, #tpu.memory_space<vmem>>, %arg4: memref<1x64xf32, #tpu.memory_space<vmem>>, %arg5: memref<64x128xf32, #tpu.memory_space<vmem>>, %arg6: memref<1x128xf32, #tpu.memory_space<vmem>>, %arg7: memref<16x128xf32, #tpu.memory_space<vmem>>) attributes {dimension_semantics = [#tpu.dimension_semantics<parallel>, #tpu.dimension_semantics<arbitrary>], iteration_bounds = array<i64: 1, 1>, scalar_prefetch = 0 : i64, scratch_operands = 0 : i64, tpu.core_type = #tpu.core_type<tc>, window_params = [{transform_indices = @transform_0, window_bounds = array<i64: 16, 32>}, {transform_indices = @transform_1, window_bounds = array<i64: 32, 64>}, {transform_indices = @transform_2, window_bounds = array<i64: 1, 64>}, {transform_indices = @transform_3, window_bounds = array<i64: 64, 128>}, {pipeline_mode = #tpu.pipeline_mode<synchronous>, transform_indices = @transform_4, window_bounds = array<i64: 1, 128>}, {transform_indices = @transform_5, window_bounds = array<i64: 16, 128>}]} {
    %c0_i32 = arith.constant 0 : i32
    %0 = arith.cmpi eq, %arg1, %c0_i32 : i32
    %1 = arith.extui %0 : i1 to i32
    %c0_i32_0 = arith.constant 0 : i32
    %2 = arith.cmpi ne, %1, %c0_i32_0 : i32
    scf.if %2 {
      %c0_16 = arith.constant 0 : index
      %c0_17 = arith.constant 0 : index
      %22 = vector.load %arg6[%c0_16, %c0_17] : memref<1x128xf32, #tpu.memory_space<vmem>>, vector<1x128xf32>
      %23 = vector.shape_cast %22 : vector<1x128xf32> to vector<1x128xf32>
      %24 = vector.broadcast %23 : vector<1x128xf32> to vector<16x128xf32>
      %c0_18 = arith.constant 0 : index
      %c0_19 = arith.constant 0 : index
      %25 = vector.load %arg7[%c0_18, %c0_19] : memref<16x128xf32, #tpu.memory_space<vmem>>, vector<16x128xf32>
      tpu.vector_store %arg7[%c0_18, %c0_19], %24 {strides = array<i32>} : memref<16x128xf32, #tpu.memory_space<vmem>>, vector<16x128xf32>,
    } else {
    }
    %c0 = arith.constant 0 : index
    %c0_1 = arith.constant 0 : index
    %3 = vector.load %arg2[%c0, %c0_1] : memref<16x32xf32, #tpu.memory_space<vmem>>, vector<16x32xf32>
    %c0_2 = arith.constant 0 : index
    %c0_3 = arith.constant 0 : index
    %4 = vector.load %arg3[%c0_2, %c0_3] : memref<32x64xf32, #tpu.memory_space<vmem>>, vector<32x64xf32>
    %cst = arith.constant dense<0.000000e+00> : vector<16x64xf32>
    %5 = tpu.matmul %3, %4, %cst {dimension_numbers = #tpu.dot_dimension_numbers<[1], [0], [0], [1], [0, 0, 1, 1], [], []>} : vector<16x32xf32>, vector<32x64xf32>, vector<16x64xf32> -> vector<16x64xf32>
    %c0_4 = arith.constant 0 : index
    %c0_5 = arith.constant 0 : index
    %6 = vector.load %arg4[%c0_4, %c0_5] : memref<1x64xf32, #tpu.memory_space<vmem>>, vector<1x64xf32>
    %7 = vector.broadcast %6 : vector<1x64xf32> to vector<16x64xf32>
    %8 = arith.addf %5, %7 : vector<16x64xf32>
    %cst_6 = arith.constant 5.000000e-01 : f32
    %9 = vector.broadcast %cst_6 : f32 to vector<16x64xf32>
    %10 = arith.mulf %9, %8 : vector<16x64xf32>
    %cst_7 = arith.constant 0.707106769 : f32
    %11 = vector.broadcast %cst_7 : f32 to vector<16x64xf32>
    %12 = arith.mulf %8, %11 : vector<16x64xf32>
    %13 = math.erf %12 : vector<16x64xf32>
    %cst_8 = arith.constant 1.000000e+00 : f32
    %14 = vector.broadcast %cst_8 : f32 to vector<16x64xf32>
    %15 = arith.addf %14, %13 : vector<16x64xf32>
    %16 = arith.mulf %10, %15 : vector<16x64xf32>
    %c0_9 = arith.constant 0 : index
    %c0_10 = arith.constant 0 : index
    %17 = vector.load %arg7[%c0_9, %c0_10] : memref<16x128xf32, #tpu.memory_space<vmem>>, vector<16x128xf32>
    %c0_11 = arith.constant 0 : index
    %c0_12 = arith.constant 0 : index
    %18 = vector.load %arg5[%c0_11, %c0_12] : memref<64x128xf32, #tpu.memory_space<vmem>>, vector<64x128xf32>
    %cst_13 = arith.constant dense<0.000000e+00> : vector<16x128xf32>
    %19 = tpu.matmul %16, %18, %cst_13 {dimension_numbers = #tpu.dot_dimension_numbers<[1], [0], [0], [1], [0, 0, 1, 1], [], []>} : vector<16x64xf32>, vector<64x128xf32>, vector<16x128xf32> -> vector<16x128xf32>
    %20 = arith.addf %17, %19 : vector<16x128xf32>
    %c0_14 = arith.constant 0 : index
    %c0_15 = arith.constant 0 : index
    %21 = vector.load %arg7[%c0_14, %c0_15] : memref<16x128xf32, #tpu.memory_space<vmem>>, vector<16x128xf32>
    tpu.vector_store %arg7[%c0_14, %c0_15], %20 {strides = array<i32>} : memref<16x128xf32, #tpu.memory_space<vmem>>, vector<16x128xf32>,
    return
  }
  func.func @transform_0(%arg0: i32, %arg1: i32) -> (i32, i32) {
    %c0_i32 = arith.constant 0 : i32
    %c0_i32_0 = arith.constant 0 : i32
    return %arg0, %c0_i32 : i32, i32
  }
  func.func @transform_1(%arg0: i32, %arg1: i32) -> (i32, i32) {
    %c0_i32 = arith.constant 0 : i32
    %c0_i32_0 = arith.constant 0 : i32
    return %c0_i32, %arg1 : i32, i32
  }
  func.func @transform_2(%arg0: i32, %arg1: i32) -> (i32, i32) {
    %c0_i32 = arith.constant 0 : i32
    %c0_i32_0 = arith.constant 0 : i32
    return %c0_i32, %arg1 : i32, i32
  }
  func.func @transform_3(%arg0: i32, %arg1: i32) -> (i32, i32) {
    %c0_i32 = arith.constant 0 : i32
    %c0_i32_0 = arith.constant 0 : i32
    return %arg1, %c0_i32 : i32, i32
  }
  func.func @transform_4(%arg0: i32, %arg1: i32) -> (i32, i32) {
    %c0_i32 = arith.constant 0 : i32
    %c0_i32_0 = arith.constant 0 : i32
    %c0_i32_1 = arith.constant 0 : i32
    return %c0_i32, %c0_i32_0 : i32, i32
  }
  func.func @transform_5(%arg0: i32, %arg1: i32) -> (i32, i32) {
    %c0_i32 = arith.constant 0 : i32
    %c0_i32_0 = arith.constant 0 : i32
    return %arg0, %c0_i32 : i32, i32
  }
}

</mosaic_0001>

<bundles_post_ra>
// kernel: mlp_forward.1
= control target key start
LH: loop header
LB: loop body
LE: loop exit
PB: predicated region body
PF: predicated region fallthrough
CT: control target
= control target key end

     0   :  { %10 = vsyncpa [#allocation3], 0  ;;  %s446_s0 = inlined_call_operand.hbm [shape: f32[16,32], index: 0, kind: input, shape index: {}]   ;;  %s447_s1 = inlined_call_operand.hbm [shape: f32[32,64], index: 1, kind: input, shape index: {}]   ;;  %s448_s2 = inlined_call_operand.vmem [shape: f32[1,64], index: 2, kind: input, shape index: {}]   ;;  %s449_s3 = inlined_call_operand.hbm [shape: f32[64,128], index: 3, kind: input, shape index: {}]   ;;  %s450_s4 = inlined_call_operand.vmem [shape: f32[1,128], index: 4, kind: input, shape index: {}]   ;;  %s451_s5 = inlined_call_operand.vmem [shape: f32[16,128], index: 5, kind: output, shape index: {}]  }
   0x1   :  { %11 = vsyncpa [#allocation5], 0  ;;  %s29_s20 = sshll.u32 %s447_s1, 4  ;;  %s360_s21 = smov [#allocation4]   ;;  %s30_s20 = int_to_ptr.hbm [resolvable:$true] %s29_s20 }
   0x2   :  { %s31_s22 = sshll.u32 %s360_s21, 4  ;;  %s16_s25 = sshll.u32 %s446_s0, 4  ;;  %s32_s22 = int_to_ptr.vmem [resolvable:$true] %s31_s22  ;;  %s17_s25 = int_to_ptr.hbm [resolvable:$true] %s16_s25 }
   0x3   :  { %s361_s26 = smov 128   ;;  %s362_s27 = smov 8  }
   0x4   :  { %37 = dma.hbm_to_vmem [thread:$0]  %s30_s20, 512, %s32_s22, [#allocation5], %s361_s26, %s361_s26, %s362_s27  }
   0x5   :  { %s363_s28 = smov [#allocation2]   ;;  %s44_s7 = sshll.u32 %s449_s3, 4  ;;  %s45_s7 = int_to_ptr.hbm [resolvable:$true] %s44_s7 }
   0x6   :  { %s18_s29 = sshll.u32 %s363_s28, 4  ;;  %s364_s1 = smov [#allocation6]   ;;  %s19_s29 = int_to_ptr.vmem [resolvable:$true] %s18_s29 }
   0x7   :  { %24 = dma.hbm_to_vmem [thread:$0]  %s17_s25, 256, %s19_s29, [#allocation3], %s361_s26, %s361_s26, %s362_s27  }
   0x8   :  { %s46_s8 = sshll.u32 %s364_s1, 4  ;;  %s47_s8 = int_to_ptr.vmem [resolvable:$true] %s46_s8 }
   0x9   :  { %52 = dma.hbm_to_vmem [thread:$0]  %s45_s7, 1024, %s47_s8, [#allocation5], %s361_s26, %s361_s26, %s362_s27  }
   0xa   :  { %356 = dma.done.wait [#allocation3], 256  }
   0xb   :  { %357 = vsyncadd [#allocation3], 4294967040 }
   0xc   :  { %358 = dma.done.wait [#allocation5], 1536  }
   0xd   :  { %359 = vsyncadd [#allocation5], 4294965760  ;;  %v82_v0 = vld [vmem:[#allocation4 + $0x18] sm:$0xff]  ;;  %v81_v1 = vld [vmem:[#allocation4 + $0x10] sm:$0xff]  ;;  %vm87_vm0 = vcmask 261120   ;;  %vm215_vm9 = vcmask 523264  }
   0xe   :  { %106 = vmatpush.msra.mxu0 %v82_v0  ;;  %261 = vmatpush.msra.mxu3 %v82_v0  ;;  %v80_v2 = vld [vmem:[#allocation4 + $0x8] sm:$0xff]  ;;  %v79_v3 = vld [vmem:[#allocation4] sm:$0xff]  ;;  %v77_v4 = vld [vmem:[#allocation2] sm:$0xff] }
   0xf   :  { %v78_v5 = vld [vmem:[#allocation2 + $0x8] sm:$0xff]  ;;  %v278_v6 = vld [vmem:[%s448_s2] ss:$0 sm:$0xff]  ;;  %v212_v22 = vld [vmem:[#allocation6 + $0x28] sm:$0xff] }
  0x10   :  { %107 = vmatpush.msra.mxu0 %v81_v1  ;;  %262 = vmatpush.msra.mxu3 %v81_v1  ;;  %v214_v14 = vld [vmem:[#allocation6 + $0x38] sm:$0xff]  ;;  %v213_v18 = vld [vmem:[#allocation6 + $0x30] sm:$0xff]  ;;  %v211_v26 = vld [vmem:[#allocation6 + $0x20] sm:$0xff] }
  0x11   :  { %230 = vmatpush.msra.mxu1 %v214_v14  ;;  %265 = vmatpush.msra.mxu2 %v214_v14  ;;  %v210_v31 = vld [vmem:[#allocation6 + $0x18] sm:$0xff]  ;;  %v209_v35 = vld [vmem:[#allocation6 + $0x10] sm:$0xff]  ;;  %v208_v40 = vld [vmem:[#allocation6 + $0x8] sm:$0xff] }
  0x12   :  { %108 = vmatpush.msra.mxu0 %v80_v2  ;;  %263 = vmatpush.msra.mxu3 %v80_v2  ;;  %v207_v42 = vld [vmem:[#allocation6] sm:$0xff] }
  0x13   :  { %231 = vmatpush.msra.mxu1 %v213_v18  ;;  %266 = vmatpush.msra.mxu2 %v213_v18 }
  0x14   :  { %109 = vmatpush.msra.mxu0 %v79_v3  ;;  %264 = vmatpush.msra.mxu3 %v79_v3 }
  0x15   :  { %255 = vmatmul.msk.f32.vlgmr.msra.gmra.mxu0 %vm87_vm0, %v77_v4  ;;  %256 = vmatmul.msk.f32.vlgmr.msra.gmra.mxu3 %vm87_vm0, %v78_v5 }
  0x16   :  { %232 = vmatpush.msra.mxu1 %v212_v22  ;;  %267 = vmatpush.msra.mxu2 %v212_v22 }
  0x18   :  { %233 = vmatpush.msra.mxu1 %v211_v26  ;;  %268 = vmatpush.msra.mxu2 %v211_v26 }
  0x1a   :  { %234 = vmatpush.msra.mxu1 %v210_v31  ;;  %269 = vmatpush.msra.mxu2 %v210_v31 }
  0x1c   :  { %235 = vmatpush.msra.mxu1 %v209_v35  ;;  %270 = vmatpush.msra.mxu2 %v209_v35 }
  0x1e   :  { %236 = vmatpush.msra.mxu1 %v208_v40  ;;  %271 = vmatpush.msra.mxu2 %v208_v40 }
  0x20   :  { %237 = vmatpush.msra.mxu1 %v207_v42  ;;  %272 = vmatpush.msra.mxu2 %v207_v42 }
  0x92   :  { %v111_v7 = vpop.f32.mrf.mxu0 }
  0x93   :  { %v407_v8 = vadd.f32 %v278_v6, %v111_v7 }
  0x95   :  { %v410_v9 = vmul.f32 0.70710677, %v407_v8  ;;  %v117_v26 = vmul.f32 0.5, %v407_v8  ;;  %v279_v8 = vld [vmem:[%s450_s4] ss:$0 sm:$0xff] }
  0x97   :  { %v121_v10 = vmul.f32 %v410_v9, %v410_v9 }
  0x98   :  { %v114_v11 = vpop.f32.mrf.mxu3 }
  0x99   :  { %v414_v12 = vmin.f32 %v121_v10, 16.0  ;;  %v416_v13 = vadd.f32 %v278_v6, %v114_v11 }
  0x9b   :  { %v123_v15 = vmul.f32 2.1237322e-06, %v414_v12  ;;  %v134_v16 = vmul.f32 3.8918573e-05, %v414_v12  ;;  %v421_v17 = vmul.f32 0.70710677, %v416_v13 }
  0x9d   :  { %v124_v19 = vadd.f32 0.00028619796, %v123_v15  ;;  %v135_v20 = vadd.f32 0.001143296, %v134_v16  ;;  %v161_v21 = vmul.f32 %v421_v17, %v421_v17 }
  0x9f   :  { %v125_v23 = vmul.f32 %v124_v19, %v414_v12  ;;  %v136_v24 = vmul.f32 %v135_v20, %v414_v12  ;;  %v162_v25 = vmin.f32 %v161_v21, 16.0 }
  0xa1   :  { %v126_v27 = vadd.f32 0.0036580483, %v125_v23  ;;  %v137_v28 = vadd.f32 0.014752088, %v136_v24  ;;  %v163_v29 = vmul.f32 2.1237322e-06, %v162_v25 }
  0xa2   :  { %v174_v30 = vmul.f32 3.8918573e-05, %v162_v25 }
  0xa3   :  { %v138_v32 = vmul.f32 %v137_v28, %v414_v12  ;;  %v164_v33 = vadd.f32 0.00028619796, %v163_v29  ;;  %v127_v37 = vmul.f32 %v126_v27, %v414_v12 }
  0xa4   :  { %v175_v34 = vadd.f32 0.001143296, %v174_v30 }
  0xa5   :  { %v139_v36 = vadd.f32 0.112945676, %v138_v32  ;;  %v165_v38 = vmul.f32 %v164_v33, %v162_v25  ;;  %v128_v46 = vadd.f32 0.05243302, %v127_v37  ;;  %v118_v33 = vmul.f32 0.5, %v416_v13 }
  0xa6   :  { %v176_v39 = vmul.f32 %v175_v34, %v162_v25 }
  0xa7   :  { %v140_v41 = vmul.f32 %v139_v36, %v414_v12  ;;  %v166_v45 = vadd.f32 0.0036580483, %v165_v38  ;;  %v129_v52 = vmul.f32 %v128_v46, %v414_v12 }
  0xa8   :  { %v177_v43 = vadd.f32 0.014752088, %v176_v39 }
  0xa9   :  { %v141_v44 = vadd.f32 0.4994258, %v140_v41  ;;  %v167_v51 = vmul.f32 %v166_v45, %v162_v25  ;;  %v130_v56 = vadd.f32 0.18741608, %v129_v52 }
  0xaa   :  { %v178_v47 = vmul.f32 %v177_v43, %v162_v25 }
  0xab   :  { %v142_v48 = vmul.f32 %v141_v44, %v414_v12  ;;  %v168_v55 = vadd.f32 0.05243302, %v167_v51  ;;  %v131_v61 = vmul.f32 %v130_v56, %v414_v12 }
  0xac   :  { %v179_v49 = vadd.f32 0.112945676, %v178_v47 }
  0xad   :  { %v143_v50 = vadd.f32 1.0, %v142_v48  ;;  %v169_v60 = vmul.f32 %v168_v55, %v162_v25  ;;  %v132_v2 = vadd.f32 1.1283791, %v131_v61 }
  0xae   :  { %v180_v53 = vmul.f32 %v179_v49, %v162_v25 }
  0xaf   :  { %280 = vrcp.f32 %v143_v50  ;;  %v155_v0 = vand.u32 2147483648, %v143_v50  ;;  %v170_v1 = vadd.f32 0.18741608, %v169_v60  ;;  %v153_v4 = vand.u32 2147483647, %v143_v50 }
  0xb0   :  { %v181_v54 = vadd.f32 0.4994258, %v180_v53  ;;  %vm149_vm2 = vweird.f32 %v143_v50  ;;  %v133_v14 = vmul.f32 %v132_v2, %v410_v9 }
  0xb1   :  { %v156_v7 = vor.u32 1.1754944e-38, %v155_v0  ;;  %v171_v10 = vmul.f32 %v170_v1, %v162_v25  ;;  %vm154_vm4 = vcmp.eq.f32.partialorder %v153_v4, 8.507059e+37 }
  0xb2   :  { %v182_v57 = vmul.f32 %v181_v54, %v162_v25 }
  0xb3   :  { %v172_v20 = vadd.f32 1.1283791, %v171_v10 }
  0xb4   :  { %v183_v58 = vadd.f32 1.0, %v182_v57 }
  0xb5   :  { %v281_v59 = vpop.eup %280  ;;  %v173_v9 = vmul.f32 %v172_v20, %v421_v17 }
  0xb6   :  { %v145_v62 = vmul.f32 %v281_v59, %v143_v50  ;;  %282 = vrcp.f32 %v183_v58  ;;  %vm150_vm1 = vweird.f32 %v281_v59  ;;  %v195_v19 = vand.u32 2147483648, %v183_v58 }
  0xb7   :  { %vm151_vm3 = vmor %vm149_vm2, %vm150_vm1  ;;  %v193_v22 = vand.u32 2147483647, %v183_v58  ;;  %vm189_vm6 = vweird.f32 %v183_v58 }
  0xb8   :  { %v146_v63 = vsub.f32 1.0, %v145_v62  ;;  %v196_v25 = vor.u32 1.1754944e-38, %v195_v19 }
  0xb9   :  { %vm194_vm8 = vcmp.eq.f32.partialorder %v193_v22, 8.507059e+37 }
  0xba   :  { %v147_v3 = vmul.f32 %v281_v59, %v146_v63 }
  0xbc   :  { %v283_v5 = vpop.eup %282  ;;  %v148_v6 = vadd.f32 %v281_v59, %v147_v3 }
  0xbd   :  { %v185_v11 = vmul.f32 %v283_v5, %v183_v58  ;;  %vm190_vm5 = vweird.f32 %v283_v5 }
  0xbe   :  { %v152_v15 = vsel %vm151_vm3, %v281_v59, %v148_v6  ;;  %vm191_vm7 = vmor %vm189_vm6, %vm190_vm5 }
  0xbf   :  { %v157_v12 = vsel %vm154_vm4, %v156_v7, %v152_v15  ;;  %v186_v16 = vsub.f32 1.0, %v185_v11 }
  0xc0   :  { %v158_v18 = vmul.f32 %v157_v12, %v133_v14 }
  0xc1   :  { %v187_v21 = vmul.f32 %v283_v5, %v186_v16 }
  0xc2   :  { %v257_v23 = vclamps-f32 %v158_v18, 1.0 }
  0xc3   :  { %v188_v24 = vadd.f32 %v283_v5, %v187_v21 }
  0xc4   :  { %v201_v27 = vadd.f32 1.0, %v257_v23 }
  0xc5   :  { %v192_v28 = vsel %vm191_vm7, %v283_v5, %v188_v24 }
  0xc6   :  { %v197_v29 = vsel %vm194_vm8, %v196_v25, %v192_v28  ;;  %v203_v30 = vmul.f32 %v201_v27, %v117_v26 }
  0xc7   :  { %v198_v31 = vmul.f32 %v197_v29, %v173_v9 }
  0xc8   :  { %259 = vmatmul.msk.f32.vlgmr.msra.gmra.mxu1 %vm215_vm9, %v203_v30 }
  0xc9   :  { %v258_v32 = vclamps-f32 %v198_v31, 1.0 }
  0xcb   :  { %v202_v34 = vadd.f32 1.0, %v258_v32 }
  0xcd   :  { %v204_v35 = vmul.f32 %v202_v34, %v118_v33 }
  0xcf   :  { %260 = vmatmul.msk.f32.vlgmr.msra.gmra.mxu2 %vm215_vm9, %v204_v35 }
 0x145   :  { %v239_v36 = vpop.f32.mrf.mxu1 }
 0x146   :  { %v245_v37 = vadd.f32 %v279_v8, %v239_v36 }
 0x148   :  { %247 = vst [vmem:[%s451_s5] sm:$0xff] %v245_v37 }
 0x152   :  { %v242_v17 = vpop.f32.mrf.mxu2 }
 0x153   :  { %v246_v38 = vadd.f32 %v279_v8, %v242_v17 }
 0x155   :  { %248 = vst [vmem:[%s451_s5 + $0x8] sm:$0xff] %v246_v38 }
 0x156   :  { %253 = vsyncpa [#allocation3], 1 }
 0x157   :  { %254 = vsyncpa [#allocation5], 1 }

</bundles_post_ra>
